<compile_context>
chip_gen: v5e
topology: v5e:2x2
jax: 0.10.0
libtpu: 0.0.40
codegen_flags: <defaults>
</compile_context>

<pallas_src>
import functools

import jax
import jax.numpy as jnp
from jax.experimental import pallas as pl
from jax.experimental.pallas import tpu as pltpu

_NEG = -1e30  # plain Python float "minus infinity" fill; exp() underflows to 0


def _mlce_kernel(preds_ref, target_ref, out_ref, acc_ref, *,
                 rows_per_block, total_rows, blocks_per_core, need_row_mask):
    i = pl.program_id(1)  # row-block index within this core

    @pl.when(i == 0)
    def _init():
        acc_ref[...] = jnp.zeros_like(acc_ref)

    preds = preds_ref[...].astype(jnp.float32)   # (tile, C)
    is_pos = target_ref[...] != 0                # labels in native dtype, 0/1

    # Signed logits: +preds for negative classes, -preds for positive classes.
    t = jnp.where(is_pos, -preds, preds)

    # Per-row maxima of each branch; the implicit appended 0-logit caps them at >= 0,
    # so every exp argument below is <= 0 (no overflow, garbage rows stay row-local).
    m_neg = jnp.maximum(jnp.max(jnp.where(is_pos, _NEG, t), axis=-1, keepdims=True), 0.0)
    m_pos = jnp.maximum(jnp.max(jnp.where(is_pos, t, _NEG), axis=-1, keepdims=True), 0.0)

    # Single block-sized exp; branch membership handled with selects (VALU has slack).
    e = jnp.exp(t - jnp.where(is_pos, m_pos, m_neg))
    s_neg = jnp.sum(jnp.where(is_pos, 0.0, e), axis=-1, keepdims=True) + jnp.exp(-m_neg)
    s_pos = jnp.sum(jnp.where(is_pos, e, 0.0), axis=-1, keepdims=True) + jnp.exp(-m_pos)
    loss = m_neg + jnp.log(s_neg) + m_pos + jnp.log(s_pos)      # (tile, 1)

    if need_row_mask:
        # Only emitted when a partial edge block or a duplicated (clamped) block
        # exists; zeroes padded / duplicate rows before they reach the accumulator.
        c = pl.program_id(0)
        row0 = (c * blocks_per_core + i) * rows_per_block
        row_ids = row0 + jax.lax.broadcasted_iota(jnp.int32, loss.shape, 0)
        loss = jnp.where(row_ids < total_rows, loss, 0.0)

    acc_ref[...] += loss

    @pl.when(i == blocks_per_core - 1)
    def _finalize():
        out_ref[...] = jnp.sum(acc_ref[...], axis=0, keepdims=True).reshape(1, 1, 1)


def _vmem_limit_bytes():
    try:
        cap = int(pltpu.get_tpu_info().vmem_capacity_bytes)
    except Exception:
        cap = 64 * 1024 * 1024  # conservative (v7x-sized) fallback
    return min(cap // 2, 64 * 1024 * 1024)


def _choose_row_tile(n_rows, n_classes, override=None):
    if override is None:
        # ~1 MiB for the f32 working copy of one preds block.  The body holds a
        # handful of block-sized f32 temporaries and BlockSpec double-buffers
        # both inputs, so total VMEM stays ~10 MiB even on v7x (32 MiB scoped),
        # while a >=1 MiB block keeps DMA time >> the ~0.35 us per-step overhead.
        tile = (1 << 20) // max(n_classes * 4, 1)
    else:
        tile = int(override)
    if tile >= n_rows:
        return n_rows            # full array along rows: always a legal block
    return max(8, (tile // 8) * 8)


def multilabel_categorical_crossentropy(preds, target, *, row_block=None):
    """preds, target: same shape (..., num_classes). Returns scalar f32 mean loss.

    target may be float 0/1, bool, or int - only `!= 0` is used in-kernel.
    """
    assert preds.shape == target.shape
    n_classes = preds.shape[-1]
    n_rows = preds.size // n_classes

    # Free, row-major reshapes only: no wrapper-side transpose or dtype cast.
    p2 = preds.reshape(n_rows, n_classes)
    t2 = target.reshape(n_rows, n_classes)

    tile = _choose_row_tile(n_rows, n_classes, row_block)
    nb_total = pl.cdiv(n_rows, tile)
    num_cores = 2 if nb_total >= 2 else 1      # v7x: rows split across both TCs
    nbpc = pl.cdiv(nb_total, num_cores)        # row blocks per core
    # Mask is needed if the last real block is partial or the core split creates
    # duplicated (clamped) virtual blocks.
    need_row_mask = (num_cores * nbpc * tile != n_rows)

    blk = (tile, n_classes)
    idx = lambda c, i: (jnp.minimum(c * nbpc + i, nb_total - 1), 0)

    kernel = functools.partial(
        _mlce_kernel, rows_per_block=tile, total_rows=n_rows,
        blocks_per_core=nbpc, need_row_mask=need_row_mask)

    partials = pl.pallas_call(
        kernel,
        out_shape=jax.ShapeDtypeStruct((num_cores, 1, 1), jnp.float32),
        grid=(num_cores, nbpc),
        in_specs=[pl.BlockSpec(blk, idx), pl.BlockSpec(blk, idx)],
        out_specs=pl.BlockSpec((1, 1, 1), lambda c, i: (c, 0, 0)),
        scratch_shapes=[pltpu.VMEM((tile, 1), jnp.float32)],
        compiler_params=pltpu.CompilerParams(
            dimension_semantics=("parallel", "arbitrary"),
            vmem_limit_bytes=_vmem_limit_bytes(),
        ),
    )(p2, t2)
    return jnp.sum(partials) / n_rows


def _reference(preds, target):
    # pure-JAX reference mirroring the PyTorch forward
    preds = (1 - 2 * target) * preds
    preds_neg = preds - target * 1e12
    preds_pos = preds - (1 - target) * 1e12
    zeros = jnp.zeros_like(preds[..., :1])
    preds_neg = jnp.concatenate([preds_neg, zeros], axis=-1)
    preds_pos = jnp.concatenate([preds_pos, zeros], axis=-1)
    neg_loss = jax.scipy.special.logsumexp(preds_neg, axis=-1)
    pos_loss = jax.scipy.special.logsumexp(preds_pos, axis=-1)
    return (neg_loss + pos_loss).mean()


def _check(shape, key, **kw):
    k1, k2 = jax.random.split(key)
    preds = jax.random.normal(k1, shape, dtype=jnp.float32) * 3.0
    target = jax.random.bernoulli(k2, p=0.3, shape=shape).astype(jnp.float32)
    loss = jax.block_until_ready(
        multilabel_categorical_crossentropy(preds, target, **kw))
    ref = _reference(preds, target)
    assert jnp.allclose(loss, ref, rtol=2e-5, atol=2e-5), (shape, loss, ref)


if __name__ == "__main__":
    keys = jax.random.split(jax.random.PRNGKey(0), 3)

    # main small multi-label setup: batch=2, seq=4, num_labels=16 (single block)
    _check((2, 4, 16), keys[0])
    # multi-block path: partial edge block + dual-core split with a clamped block
    _check((6, 50, 16), keys[1], row_block=128)
    # C >= 128 path, multi-block with a partial (masked) edge block
    _check((70, 160), keys[2], row_block=32)

    print("KERNEL_OK")
</pallas_src>

<mosaic_0001>
module attributes {stable_mosaic.version = 11 : i64} {
  func.func @_mlce_kernel(%arg0: i32, %arg1: i32, %arg2: memref<8x16xf32, #tpu.memory_space<vmem>>, %arg3: memref<8x16xf32, #tpu.memory_space<vmem>>, %arg4: memref<1x1x1xf32, #tpu.memory_space<vmem>>, %arg5: memref<8x1xf32, #tpu.memory_space<vmem>>) attributes {dimension_semantics = [#tpu.dimension_semantics<parallel>, #tpu.dimension_semantics<arbitrary>], iteration_bounds = array<i64: 1, 1>, scalar_prefetch = 0 : i64, scratch_operands = 1 : i64, tpu.core_type = #tpu.core_type<tc>, window_params = [{transform_indices = @transform_0, window_bounds = array<i64: 8, 16>}, {transform_indices = @transform_1, window_bounds = array<i64: 8, 16>}, {transform_indices = @transform_2, window_bounds = array<i64: 1, 1, 1>}]} {
    %c0_i32 = arith.constant 0 : i32
    %0 = arith.cmpi eq, %arg1, %c0_i32 : i32
    %1 = arith.extui %0 : i1 to i32
    %c0_i32_0 = arith.constant 0 : i32
    %2 = arith.cmpi ne, %1, %c0_i32_0 : i32
    scf.if %2 {
      %cst_23 = arith.constant 0.000000e+00 : f32
      %56 = vector.broadcast %cst_23 : f32 to vector<8x1xf32>
      %c0_24 = arith.constant 0 : index
      %c0_25 = arith.constant 0 : index
      %57 = vector.load %arg5[%c0_24, %c0_25] : memref<8x1xf32, #tpu.memory_space<vmem>>, vector<8x1xf32>
      tpu.vector_store %arg5[%c0_24, %c0_25], %56 {strides = array<i32>} : memref<8x1xf32, #tpu.memory_space<vmem>>, vector<8x1xf32>,
    } else {
    }
    %c0 = arith.constant 0 : index
    %c0_1 = arith.constant 0 : index
    %3 = vector.load %arg2[%c0, %c0_1] : memref<8x16xf32, #tpu.memory_space<vmem>>, vector<8x16xf32>
    %c0_2 = arith.constant 0 : index
    %c0_3 = arith.constant 0 : index
    %4 = vector.load %arg3[%c0_2, %c0_3] : memref<8x16xf32, #tpu.memory_space<vmem>>, vector<8x16xf32>
    %cst = arith.constant 0.000000e+00 : f32
    %5 = vector.broadcast %cst : f32 to vector<8x16xf32>
    %6 = arith.cmpf one, %4, %5 : vector<8x16xf32>
    %cst_4 = arith.constant 0.000000e+00 : f32
    %7 = vector.broadcast %cst_4 : f32 to vector<8x16xf32>
    %8 = arith.subf %7, %3 : vector<8x16xf32>
    %9 = arith.select %6, %8, %3 : vector<8x16xi1>, vector<8x16xf32>
    %cst_5 = arith.constant -1.000000e+30 : f32
    %10 = vector.broadcast %cst_5 : f32 to vector<8x16xf32>
    %11 = arith.select %6, %10, %9 : vector<8x16xi1>, vector<8x16xf32>
    %cst_6 = arith.constant dense<0xFF800000> : vector<8xf32>
    %12 = vector.multi_reduction <maximumf>, %11, %cst_6 [1] : vector<8x16xf32> to vector<8xf32>
    %13 = vector.shape_cast %12 : vector<8xf32> to vector<8x1xf32>
    %cst_7 = arith.constant 0.000000e+00 : f32
    %14 = vector.broadcast %cst_7 : f32 to vector<8x1xf32>
    %15 = arith.maximumf %13, %14 : vector<8x1xf32>
    %cst_8 = arith.constant -1.000000e+30 : f32
    %16 = vector.broadcast %cst_8 : f32 to vector<8x16xf32>
    %17 = arith.select %6, %9, %16 : vector<8x16xi1>, vector<8x16xf32>
    %cst_9 = arith.constant dense<0xFF800000> : vector<8xf32>
    %18 = vector.multi_reduction <maximumf>, %17, %cst_9 [1] : vector<8x16xf32> to vector<8xf32>
    %19 = vector.shape_cast %18 : vector<8xf32> to vector<8x1xf32>
    %cst_10 = arith.constant 0.000000e+00 : f32
    %20 = vector.broadcast %cst_10 : f32 to vector<8x1xf32>
    %21 = arith.maximumf %19, %20 : vector<8x1xf32>
    %22 = vector.shape_cast %21 : vector<8x1xf32> to vector<8x1xf32>
    %23 = vector.broadcast %22 : vector<8x1xf32> to vector<8x16xf32>
    %24 = vector.shape_cast %15 : vector<8x1xf32> to vector<8x1xf32>
    %25 = vector.broadcast %24 : vector<8x1xf32> to vector<8x16xf32>
    %26 = arith.select %6, %23, %25 : vector<8x16xi1>, vector<8x16xf32>
    %27 = arith.subf %9, %26 : vector<8x16xf32>
    %28 = math.exp %27 : vector<8x16xf32>
    %cst_11 = arith.constant 0.000000e+00 : f32
    %29 = vector.broadcast %cst_11 : f32 to vector<8x16xf32>
    %30 = arith.select %6, %29, %28 : vector<8x16xi1>, vector<8x16xf32>
    %cst_12 = arith.constant dense<0.000000e+00> : vector<8xf32>
    %31 = vector.multi_reduction <add>, %30, %cst_12 [1] : vector<8x16xf32> to vector<8xf32>
    %32 = vector.shape_cast %31 : vector<8xf32> to vector<8x1xf32>
    %cst_13 = arith.constant 0.000000e+00 : f32
    %33 = vector.broadcast %cst_13 : f32 to vector<8x1xf32>
    %34 = arith.subf %33, %15 : vector<8x1xf32>
    %35 = math.exp %34 : vector<8x1xf32>
    %36 = arith.addf %32, %35 : vector<8x1xf32>
    %cst_14 = arith.constant 0.000000e+00 : f32
    %37 = vector.broadcast %cst_14 : f32 to vector<8x16xf32>
    %38 = arith.select %6, %28, %37 : vector<8x16xi1>, vector<8x16xf32>
    %cst_15 = arith.constant dense<0.000000e+00> : vector<8xf32>
    %39 = vector.multi_reduction <add>, %38, %cst_15 [1] : vector<8x16xf32> to vector<8xf32>
    %40 = vector.shape_cast %39 : vector<8xf32> to vector<8x1xf32>
    %cst_16 = arith.constant 0.000000e+00 : f32
    %41 = vector.broadcast %cst_16 : f32 to vector<8x1xf32>
    %42 = arith.subf %41, %21 : vector<8x1xf32>
    %43 = math.exp %42 : vector<8x1xf32>
    %44 = arith.addf %40, %43 : vector<8x1xf32>
    %45 = math.log %36 : vector<8x1xf32>
    %46 = arith.addf %15, %45 : vector<8x1xf32>
    %47 = arith.addf %46, %21 : vector<8x1xf32>
    %48 = math.log %44 : vector<8x1xf32>
    %49 = arith.addf %47, %48 : vector<8x1xf32>
    %c0_17 = arith.constant 0 : index
    %c0_18 = arith.constant 0 : index
    %50 = vector.load %arg5[%c0_17, %c0_18] : memref<8x1xf32, #tpu.memory_space<vmem>>, vector<8x1xf32>
    %51 = arith.addf %50, %49 : vector<8x1xf32>
    %c0_19 = arith.constant 0 : index
    %c0_20 = arith.constant 0 : index
    %52 = vector.load %arg5[%c0_19, %c0_20] : memref<8x1xf32, #tpu.memory_space<vmem>>, vector<8x1xf32>
    tpu.vector_store %arg5[%c0_19, %c0_20], %51 {strides = array<i32>} : memref<8x1xf32, #tpu.memory_space<vmem>>, vector<8x1xf32>,
    %c0_i32_21 = arith.constant 0 : i32
    %53 = arith.cmpi eq, %arg1, %c0_i32_21 : i32
    %54 = arith.extui %53 : i1 to i32
    %c0_i32_22 = arith.constant 0 : i32
    %55 = arith.cmpi ne, %54, %c0_i32_22 : i32
    scf.if %55 {
      %c0_23 = arith.constant 0 : index
      %c0_24 = arith.constant 0 : index
      %56 = vector.load %arg5[%c0_23, %c0_24] : memref<8x1xf32, #tpu.memory_space<vmem>>, vector<8x1xf32>
      %cst_25 = arith.constant dense<0.000000e+00> : vector<1xf32>
      %57 = vector.multi_reduction <add>, %56, %cst_25 [0] : vector<8x1xf32> to vector<1xf32>
      %58 = vector.shape_cast %57 : vector<1xf32> to vector<1x1xf32>
      %59 = vector.shape_cast %58 : vector<1x1xf32> to vector<1x1x1xf32>
      %c0_26 = arith.constant 0 : index
      %c0_27 = arith.constant 0 : index
      %c0_28 = arith.constant 0 : index
      %60 = vector.load %arg4[%c0_26, %c0_27, %c0_28] : memref<1x1x1xf32, #tpu.memory_space<vmem>>, vector<1x1x1xf32>
      tpu.vector_store %arg4[%c0_26, %c0_27, %c0_28], %59 {strides = array<i32>} : memref<1x1x1xf32, #tpu.memory_space<vmem>>, vector<1x1x1xf32>,
    } else {
    }
    return
  }
  func.func @transform_0(%arg0: i32, %arg1: i32) -> (i32, i32) {
    %c1_i32 = arith.constant 1 : i32
    %0 = arith.muli %arg0, %c1_i32 : i32
    %1 = arith.addi %0, %arg1 : i32
    %c0_i32 = arith.constant 0 : i32
    %2 = arith.minsi %1, %c0_i32 : i32
    %c0_i32_0 = arith.constant 0 : i32
    %c0_i32_1 = arith.constant 0 : i32
    return %2, %c0_i32_0 : i32, i32
  }
  func.func @transform_1(%arg0: i32, %arg1: i32) -> (i32, i32) {
    %c1_i32 = arith.constant 1 : i32
    %0 = arith.muli %arg0, %c1_i32 : i32
    %1 = arith.addi %0, %arg1 : i32
    %c0_i32 = arith.constant 0 : i32
    %2 = arith.minsi %1, %c0_i32 : i32
    %c0_i32_0 = arith.constant 0 : i32
    %c0_i32_1 = arith.constant 0 : i32
    return %2, %c0_i32_0 : i32, i32
  }
  func.func @transform_2(%arg0: i32, %arg1: i32) -> (i32, i32, i32) {
    %c0_i32 = arith.constant 0 : i32
    %c0_i32_0 = arith.constant 0 : i32
    %c0_i32_1 = arith.constant 0 : i32
    return %arg0, %c0_i32, %c0_i32_0 : i32, i32, i32
  }
}

</mosaic_0001>

<bundles_post_ra>
// kernel: tpu_custom_call.1
= control target key start
LH: loop header
LB: loop body
LE: loop exit
PB: predicated region body
PF: predicated region fallthrough
CT: control target
= control target key end

     0   :  { %7 = vsyncpa [#allocation4], 0  ;;  %s277_s0 = inlined_call_operand.hbm [shape: f32[8,16], index: 0, kind: input, shape index: {}]   ;;  %s278_s1 = inlined_call_operand.hbm [shape: f32[8,16], index: 1, kind: input, shape index: {}]   ;;  %s279_s2 = inlined_call_operand.hbm [shape: f32[1,1,1], index: 2, kind: output, shape index: {}]  }
   0x1   :  { %8 = vsyncpa [#allocation7], 0 }
   0x2   :  { %9 = vsyncpa [#allocation5], 0  ;;  %s20_s11 = sshll.u32 %s277_s0, 4  ;;  %s236_s12 = smov [#allocation3]   ;;  %s21_s11 = int_to_ptr.hbm [resolvable:$true] %s20_s11 }
   0x3   :  { %s22_s13 = sshll.u32 %s236_s12, 4  ;;  %s36_s16 = sshll.u32 %s278_s1, 4  ;;  %s23_s13 = int_to_ptr.vmem [resolvable:$true] %s22_s13  ;;  %s37_s16 = int_to_ptr.hbm [resolvable:$true] %s36_s16 }
   0x4   :  { %25 = dma.hbm_to_vmem [thread:$0]  %s21_s11, 128, %s23_s13, [#allocation4]  }
   0x5   :  { %s237_s17 = smov [#allocation6]  }
   0x6   :  { %s38_s18 = sshll.u32 %s237_s17, 4  ;;  %s39_s18 = int_to_ptr.vmem [resolvable:$true] %s38_s18 }
   0x7   :  { %41 = dma.hbm_to_vmem [thread:$0]  %s37_s16, 128, %s39_s18, [#allocation7]  }
   0x8   :  { %230 = dma.done.wait [#allocation4], 128  }
   0x9   :  { %231 = vsyncadd [#allocation4], 4294967168 }
   0xa   :  { %232 = dma.done.wait [#allocation7], 128  }
   0xb   :  { %233 = vsyncadd [#allocation7], 4294967168  ;;  %v62_v0 = vld [vmem:[#allocation3] sm:$0xff]  ;;  %v63_v1 = vld [vmem:[#allocation6] sm:$0xff]  ;;  %vm68_vm0 = vcmask 130048   ;;  %vm60_vm2 = vcmask 7168  }
   0xc   :  { %vm64_vm1 = vcmp.ne.f32.partialorder %v63_v1, 0.0  ;;  %v65_v3 = vsub.f32 0.0, %v62_v0  ;;  %v238_v20 = vmov 0.0   ;;  %s239_s0 = smov [#allocation8]   ;;  %s129_s21 = sshll.u32 %s279_s2, 4  ;;  %vm120_vm3 = vcmask 0   ;;  %s130_s21 = int_to_ptr.hbm [resolvable:$true] %s129_s21 }
   0xd   :  { %v67_v2 = vsel %vm64_vm1, -1e+30, %v62_v0  ;;  %61 = vst.msk [vmem:[#allocation2] sm:$0xff] %vm60_vm2, %v238_v20  ;;  %s127_s1 = sshll.u32 %s239_s0, 4  ;;  %s128_s1 = int_to_ptr.vmem [resolvable:$true] %s127_s1 }
   0xe   :  { %v69_v4 = vsel %vm68_vm0, %v67_v2, -inf  ;;  %v73_v5 = vsel %vm64_vm1, %v65_v3, -1e+30  ;;  %v66_v10 = vsel %vm64_vm1, %v65_v3, %v62_v0 }
   0xf   :  { %70 = vmax.xlane.f32.xlu0 %v69_v4  ;;  %v74_v6 = vsel %vm68_vm0, %v73_v5, -inf }
  0x14   :  { %v105_v37 = vld [vmem:[#allocation2] sm:$0xff] }
  0x17   :  { %75 = vmax.xlane.f32.xlu0 %v74_v6 }
  0x82   :  { %v71_v7 = vpop.xlane.xlu0 %70 }
  0x83   :  { %v72_v9 = vmax.f32 %v71_v7, 0.0 }
  0x85   :  { %v86_v21 = vsub.f32 0.0, %v72_v9 }
  0x87   :  { %v87_v22 = vmul.f32 1.442695, %v86_v21 }
  0x8a   :  { %v76_v8 = vpop.xlane.xlu0 %75 }
  0x8b   :  { %v77_v11 = vmax.f32 %v76_v8, 0.0 }
  0x8d   :  { %v78_v12 = vsel %vm64_vm1, %v77_v11, %v72_v9  ;;  %v94_v23 = vsub.f32 0.0, %v77_v11 }
  0x8e   :  { %v79_v13 = vsub.f32 %v66_v10, %v78_v12 }
  0x8f   :  { %v95_v24 = vmul.f32 1.442695, %v94_v23 }
  0x90   :  { %v80_v14 = vmul.f32 1.442695, %v79_v13 }
  0x92   :  { %148 = vpow2.f32 %v80_v14 }
  0x93   :  { %150 = vpow2.f32 %v87_v22 }
  0x94   :  { %152 = vpow2.f32 %v95_v24 }
  0x98   :  { %v149_v15 = vpop.eup %148 }
  0x99   :  { %v82_v16 = vsel %vm64_vm1, 0.0, %v149_v15  ;;  %v90_v18 = vsel %vm64_vm1, %v149_v15, 0.0  ;;  %v151_v25 = vpop.eup %150 }
  0x9a   :  { %v83_v17 = vsel %vm68_vm0, %v82_v16, 0.0  ;;  %v91_v19 = vsel %vm68_vm0, %v90_v18, 0.0  ;;  %v153_v28 = vpop.eup %152 }
  0x9b   :  { %84 = vadd.xlane.f32.xlu1 %v83_v17 }
  0xa3   :  { %92 = vadd.xlane.f32.xlu1 %v91_v19 }
 0x10e   :  { %v85_v26 = vpop.xlane.xlu1 %84 }
 0x10f   :  { %v89_v27 = vadd.f32 %v151_v25, %v85_v26 }
 0x111   :  { %154 = vlog2.f32 %v89_v27 }
 0x116   :  { %v93_v29 = vpop.xlane.xlu1 %92 }
 0x117   :  { %v155_v30 = vpop.eup %154  ;;  %v97_v31 = vadd.f32 %v153_v28, %v93_v29 }
 0x118   :  { %v99_v32 = vmul.f32 0.6931472, %v155_v30 }
 0x119   :  { %156 = vlog2.f32 %v97_v31 }
 0x11a   :  { %v100_v33 = vadd.f32 %v99_v32, %v72_v9 }
 0x11c   :  { %v101_v35 = vadd.f32 %v100_v33, %v77_v11 }
 0x11f   :  { %v157_v34 = vpop.eup %156 }
 0x120   :  { %v103_v36 = vmul.f32 0.6931472, %v157_v34 }
 0x122   :  { %v104_v38 = vadd.f32 %v103_v36, %v101_v35 }
 0x124   :  { %v106_v39 = vadd.f32 %v105_v37, %v104_v38 }
 0x126   :  { %108 = vst.msk [vmem:[#allocation2] sm:$0xff] %vm60_vm2, %v106_v39 }
 0x12d   :  { %v112_v40 = vld [vmem:[#allocation2] sm:$0xff] }
 0x12e   :  { %v113_v41 = vsel %vm60_vm2, %v112_v40, 0.0 }
 0x12f   :  { %v114_v42 = vrot.slane %v113_v41, 4 }
 0x131   :  { %v115_v43 = vadd.f32 %v114_v42, %v113_v41 }
 0x133   :  { %v116_v44 = vrot.slane %v115_v43, 2 }
 0x135   :  { %v117_v45 = vadd.f32 %v116_v44, %v115_v43 }
 0x137   :  { %v118_v46 = vrot.slane %v117_v45, 1 }
 0x139   :  { %v119_v47 = vadd.f32 %v118_v46, %v117_v45 }
 0x13b   :  { %121 = vst.msk [vmem:[#allocation8] sm:$0x1] %vm120_vm3, %v119_v47 }
 0x13c   :  { %132 = dma.vmem_to_hbm [thread:$0]  %s128_s1, 16, %s130_s21, [#allocation5]  }
 0x13d   :  { %234 = dma.done.wait [#allocation5], 16  }
 0x13e   :  { %235 = vsyncadd [#allocation5], 4294967280 }
 0x13f   :  { %137 = vsyncpa [#allocation4], 1 }
 0x140   :  { %138 = vsyncpa [#allocation7], 1 }
 0x141   :  { %139 = vsyncpa [#allocation5], 1 }

</bundles_post_ra>
